<compile_context>
chip_gen: v6e
topology: v6e:2x2x1
jax: 0.10.0
libtpu: 0.0.40
codegen_flags: <defaults>
</compile_context>

<pallas_src>
import functools

import jax
import jax.numpy as jnp
from jax.experimental import pallas as pl
from jax.experimental.pallas import tpu as pltpu

_MIB = 1024 * 1024
_RESIDENT_WEIGHT_BYTES = 16 * _MIB   # keep the whole weight in VMEM below this
_VMEM_BUDGET_BYTES = 44 * _MIB       # fits v7x's 64 MiB physical with headroom


def _round_up(x, m):
    return ((x + m - 1) // m) * m


def _maybe_pad2d(x, rows, cols):
    r, c = x.shape
    if r == rows and c == cols:
        return x                      # skip the extra HBM pass when aligned
    return jnp.pad(x, ((0, rows - r), (0, cols - c)))


def _sigmoid(y):
    # Written out explicitly (exp goes to the EUP); matches jax.nn.sigmoid to
    # f32 rounding for the value ranges produced by a Linear layer.
    return 1.0 / (1.0 + jnp.exp(-y))


# ---------------------------------------------------------------------------
# Kernels
# ---------------------------------------------------------------------------
def _fused_kernel(x_ref, w_ref, b_ref, o_ref, *, use_bf16):
    """Fast path: whole K in one step, weight VMEM-resident, no accumulator.

    x_ref: (TM, K)  activations
    w_ref: (K, N)   weight already in (in, out) layout -> plain x @ w on MXU
    b_ref: (1, N)   bias
    o_ref: (TM, N)  output tile
    """
    x = x_ref[...]
    w = w_ref[...]
    if use_bf16:
        x = x.astype(jnp.bfloat16)
        w = w.astype(jnp.bfloat16)
    y = jax.lax.dot_general(
        x, w,
        dimension_numbers=(((1,), (0,)), ((), ())),
        preferred_element_type=jnp.float32,
    )
    y = y + b_ref[...]                           # broadcast (1, N) over rows
    o_ref[...] = _sigmoid(y).astype(o_ref.dtype)


def _tiled_kernel(x_ref, w_ref, b_ref, o_ref, acc_ref, *, use_bf16):
    """Large-dim path: (M, N, K) grid with f32 accumulator over the K axis.

    x_ref:   (TM, TK)  activations
    w_ref:   (TK, TN)  weight tile, (in, out) layout -> no in-kernel transpose
    b_ref:   (1, TN)   bias
    o_ref:   (TM, TN)  output tile
    acc_ref: (TM, TN)  f32 accumulator scratch, persists across the K axis
    """
    k = pl.program_id(2)

    @pl.when(k == 0)
    def _():
        acc_ref[...] = jnp.zeros_like(acc_ref)

    x = x_ref[...]
    w = w_ref[...]
    if use_bf16:
        x = x.astype(jnp.bfloat16)
        w = w.astype(jnp.bfloat16)
    acc_ref[...] += jax.lax.dot_general(
        x, w,
        dimension_numbers=(((1,), (0,)), ((), ())),
        preferred_element_type=jnp.float32,
    )

    @pl.when(k == pl.num_programs(2) - 1)
    def _():
        y = acc_ref[...] + b_ref[...]
        o_ref[...] = _sigmoid(y).astype(o_ref.dtype)


# ---------------------------------------------------------------------------
# Wrapper
# ---------------------------------------------------------------------------
def simple_imputer_forward(data, m, weight, bias, *, use_bf16_mxu=False):
    """Pallas equivalent of Simple_imputer.forward(data, m).

    data:   (batch, dim) float32
    m:      (batch, dim) mask — unused by the PyTorch forward, kept for parity
    weight: (dim, dim)   nn.Linear weight, PyTorch (out, in) convention
    bias:   (dim,)       nn.Linear bias
    use_bf16_mxu: cast MXU operands to bf16 (f32 accumulate). Faster on
                  v6e/v7x, but relaxes accuracy from ~1e-5 to ~1e-3.
    """
    del m  # unused, matching the reference forward exactly
    batch, dim = data.shape
    out_dim, in_dim = weight.shape
    assert in_dim == dim and out_dim == dim, "Simple_imputer uses Linear(dim, dim)"

    dtype_bytes = 4
    m8 = _round_up(batch, 8)
    f128 = _round_up(dim, 128)                 # padded feature dim (K == N)
    weight_bytes = dtype_bytes * f128 * f128

    # Transpose folded into the one-time copy (and pad, when needed): the
    # kernel sees the weight in (in, out) = (K, N) layout.
    w_t = weight.T

    if weight_bytes <= _RESIDENT_WEIGHT_BYTES:
        # ------------------------------------------------------------------
        # Fast path: weight VMEM-resident, single K step, no accumulator.
        # ------------------------------------------------------------------
        # TODO(synk): pipeline_mode=pl.Buffered(1) on the weight spec would
        # drop its unused second pipeline buffer; kept default buffering for
        # lowering safety and budgeted for 2x weight instead.
        per_row_bytes = 4 * f128 * dtype_bytes       # x (x2) + out (x2) per row
        tm_budget = (_VMEM_BUDGET_BYTES - 2 * weight_bytes) // per_row_bytes
        TM = max(8, min(512, m8, (tm_budget // 8) * 8))

        # v7x megacore: make sure the single "parallel" axis has >= 2 blocks.
        if m8 // TM <= 1 and m8 >= 16:
            TM = _round_up((m8 + 1) // 2, 8)

        M_pad = _round_up(batch, TM)
        grid_m = M_pad // TM

        x_p = _maybe_pad2d(data, M_pad, f128)
        w_p = _maybe_pad2d(w_t, f128, f128)
        b_p = _maybe_pad2d(bias.reshape(1, dim), 1, f128)

        footprint = dtype_bytes * (2 * TM * f128      # x, double-buffered
                                   + 2 * f128 * f128  # weight buffers
                                   + 2 * TM * f128    # out, double-buffered
                                   + 2 * f128)        # bias
        vmem_limit = int(min(max(footprint + 8 * _MIB, 16 * _MIB), 56 * _MIB))

        cost = pl.CostEstimate(
            flops=2 * M_pad * f128 * f128,
            transcendentals=M_pad * f128,             # exp inside sigmoid
            bytes_accessed=dtype_bytes * (M_pad * f128      # x read once
                                          + f128 * f128     # weight read once
                                          + f128            # bias
                                          + M_pad * f128),  # output
        )

        out_p = pl.pallas_call(
            functools.partial(_fused_kernel, use_bf16=use_bf16_mxu),
            out_shape=jax.ShapeDtypeStruct((M_pad, f128), data.dtype),
            grid_spec=pltpu.PrefetchScalarGridSpec(
                num_scalar_prefetch=0,
                grid=(grid_m,),
                in_specs=[
                    pl.BlockSpec((TM, f128), lambda i: (i, 0)),    # activations
                    pl.BlockSpec((f128, f128), lambda i: (0, 0)),  # resident weight
                    pl.BlockSpec((1, f128), lambda i: (0, 0)),     # bias
                ],
                out_specs=pl.BlockSpec((TM, f128), lambda i: (i, 0)),
            ),
            compiler_params=pltpu.CompilerParams(
                dimension_semantics=("parallel",),
                vmem_limit_bytes=vmem_limit,
            ),
            cost_estimate=cost,
        )(x_p, w_p, b_p)

        return out_p[:batch, :dim]

    # ----------------------------------------------------------------------
    # Large-dim fallback: (M, N, K) tiled reduction with f32 accumulator.
    # Only reached for dim_pad > 2048, so the N / K grids have several blocks
    # (megacore-friendly) and TK = 1024 keeps K steps few.
    # ----------------------------------------------------------------------
    TM = min(512, m8)
    TN = 512
    TK = 1024

    M_pad = _round_up(batch, TM)
    N_pad = _round_up(dim, TN)
    K_pad = _round_up(dim, TK)
    grid = (M_pad // TM, N_pad // TN, K_pad // TK)

    x_p = _maybe_pad2d(data, M_pad, K_pad)
    w_p = _maybe_pad2d(w_t, K_pad, N_pad)
    b_p = _maybe_pad2d(bias.reshape(1, dim), 1, N_pad)

    footprint = dtype_bytes * (2 * TM * TK + 2 * TK * TN + 2 * TM * TN
                               + TM * TN + 2 * TN)
    vmem_limit = int(min(max(footprint + 8 * _MIB, 16 * _MIB), 56 * _MIB))

    cost = pl.CostEstimate(
        flops=2 * M_pad * N_pad * K_pad,
        transcendentals=M_pad * N_pad,
        bytes_accessed=dtype_bytes * (M_pad * K_pad * grid[1]    # x re-read per N tile
                                      + K_pad * N_pad * grid[0]  # w re-read per M tile
                                      + N_pad * grid[0]          # bias
                                      + M_pad * N_pad),          # output
    )

    out_p = pl.pallas_call(
        functools.partial(_tiled_kernel, use_bf16=use_bf16_mxu),
        out_shape=jax.ShapeDtypeStruct((M_pad, N_pad), data.dtype),
        grid_spec=pltpu.PrefetchScalarGridSpec(
            num_scalar_prefetch=0,
            grid=grid,
            in_specs=[
                pl.BlockSpec((TM, TK), lambda i, j, k: (i, k)),   # activations
                pl.BlockSpec((TK, TN), lambda i, j, k: (k, j)),   # weight (K, N)
                pl.BlockSpec((1, TN), lambda i, j, k: (0, j)),    # bias
            ],
            out_specs=pl.BlockSpec((TM, TN), lambda i, j, k: (i, j)),
            scratch_shapes=[pltpu.VMEM((TM, TN), jnp.float32)],
        ),
        compiler_params=pltpu.CompilerParams(
            dimension_semantics=("parallel", "parallel", "arbitrary"),
            vmem_limit_bytes=vmem_limit,
        ),
        cost_estimate=cost,
    )(x_p, w_p, b_p)

    return out_p[:batch, :dim]


if __name__ == "__main__":
    key = jax.random.PRNGKey(0)
    k_data, k_m, k_w, k_b = jax.random.split(key, 4)

    batch, dim = 16, 32   # small shapes; exercises the resident fast path +
                          # the two-block parallel grid (megacore split)

    data = jax.random.normal(k_data, (batch, dim), dtype=jnp.float32)
    m = (jax.random.uniform(k_m, (batch, dim)) > 0.2).astype(jnp.float32)

    # Deterministic nn.Linear(dim, dim) init: uniform(-1/sqrt(dim), 1/sqrt(dim))
    bound = 1.0 / jnp.sqrt(jnp.float32(dim))
    weight = jax.random.uniform(k_w, (dim, dim), minval=-bound, maxval=bound,
                                dtype=jnp.float32)
    bias = jax.random.uniform(k_b, (dim,), minval=-bound, maxval=bound,
                              dtype=jnp.float32)

    # Plain-JAX reference.
    ref = jax.nn.sigmoid(data @ weight.T + bias)

    # Default f32 MXU path: tight tolerance.
    out = simple_imputer_forward(data, m, weight, bias)
    out = jax.block_until_ready(out)
    assert out.shape == (batch, dim)
    assert jnp.allclose(out, ref, atol=1e-5, rtol=1e-5), \
        float(jnp.max(jnp.abs(out - ref)))

    # Optional bf16-input / f32-accumulate MXU path: looser tolerance.
    out_bf16 = simple_imputer_forward(data, m, weight, bias, use_bf16_mxu=True)
    out_bf16 = jax.block_until_ready(out_bf16)
    assert jnp.allclose(out_bf16, ref, atol=5e-2, rtol=5e-2), \
        float(jnp.max(jnp.abs(out_bf16 - ref)))

    print("KERNEL_OK")
</pallas_src>

<mosaic_0001>
module attributes {stable_mosaic.version = 11 : i64} {
  func.func @_fused_kernel(%arg0: i32, %arg1: memref<8x128xf32, #tpu.memory_space<vmem>>, %arg2: memref<128x128xf32, #tpu.memory_space<vmem>>, %arg3: memref<1x128xf32, #tpu.memory_space<vmem>>, %arg4: memref<8x128xf32, #tpu.memory_space<vmem>>) attributes {dimension_semantics = [#tpu.dimension_semantics<parallel>], iteration_bounds = array<i64: 2>, scalar_prefetch = 0 : i64, scratch_operands = 0 : i64, tpu.core_type = #tpu.core_type<tc>, window_params = [{transform_indices = @transform_0, window_bounds = array<i64: 8, 128>}, {pipeline_mode = #tpu.pipeline_mode<synchronous>, transform_indices = @transform_1, window_bounds = array<i64: 128, 128>}, {pipeline_mode = #tpu.pipeline_mode<synchronous>, transform_indices = @transform_2, window_bounds = array<i64: 1, 128>}, {transform_indices = @transform_3, window_bounds = array<i64: 8, 128>}]} {
    %c0 = arith.constant 0 : index
    %c0_0 = arith.constant 0 : index
    %0 = vector.load %arg1[%c0, %c0_0] : memref<8x128xf32, #tpu.memory_space<vmem>>, vector<8x128xf32>
    %c0_1 = arith.constant 0 : index
    %c0_2 = arith.constant 0 : index
    %1 = vector.load %arg2[%c0_1, %c0_2] : memref<128x128xf32, #tpu.memory_space<vmem>>, vector<128x128xf32>
    %cst = arith.constant dense<0.000000e+00> : vector<8x128xf32>
    %2 = tpu.matmul %0, %1, %cst {dimension_numbers = #tpu.dot_dimension_numbers<[1], [0], [0], [1], [0, 0, 1, 1], [], []>} : vector<8x128xf32>, vector<128x128xf32>, vector<8x128xf32> -> vector<8x128xf32>
    %c0_3 = arith.constant 0 : index
    %c0_4 = arith.constant 0 : index
    %3 = vector.load %arg3[%c0_3, %c0_4] : memref<1x128xf32, #tpu.memory_space<vmem>>, vector<1x128xf32>
    %4 = vector.broadcast %3 : vector<1x128xf32> to vector<8x128xf32>
    %5 = arith.addf %2, %4 : vector<8x128xf32>
    %cst_5 = arith.constant 0.000000e+00 : f32
    %6 = vector.broadcast %cst_5 : f32 to vector<8x128xf32>
    %7 = arith.subf %6, %5 : vector<8x128xf32>
    %8 = math.exp %7 : vector<8x128xf32>
    %cst_6 = arith.constant 1.000000e+00 : f32
    %9 = vector.broadcast %cst_6 : f32 to vector<8x128xf32>
    %10 = arith.addf %9, %8 : vector<8x128xf32>
    %cst_7 = arith.constant 1.000000e+00 : f32
    %11 = vector.broadcast %cst_7 : f32 to vector<8x128xf32>
    %12 = arith.divf %11, %10 : vector<8x128xf32>
    %c0_8 = arith.constant 0 : index
    %c0_9 = arith.constant 0 : index
    %13 = vector.load %arg4[%c0_8, %c0_9] : memref<8x128xf32, #tpu.memory_space<vmem>>, vector<8x128xf32>
    tpu.vector_store %arg4[%c0_8, %c0_9], %12 {strides = array<i32>} : memref<8x128xf32, #tpu.memory_space<vmem>>, vector<8x128xf32>,
    return
  }
  func.func @transform_0(%arg0: i32) -> (i32, i32) {
    %c0_i32 = arith.constant 0 : i32
    %c0_i32_0 = arith.constant 0 : i32
    return %arg0, %c0_i32 : i32, i32
  }
  func.func @transform_1(%arg0: i32) -> (i32, i32) {
    %c0_i32 = arith.constant 0 : i32
    %c0_i32_0 = arith.constant 0 : i32
    %c0_i32_1 = arith.constant 0 : i32
    return %c0_i32, %c0_i32_0 : i32, i32
  }
  func.func @transform_2(%arg0: i32) -> (i32, i32) {
    %c0_i32 = arith.constant 0 : i32
    %c0_i32_0 = arith.constant 0 : i32
    %c0_i32_1 = arith.constant 0 : i32
    return %c0_i32, %c0_i32_0 : i32, i32
  }
  func.func @transform_3(%arg0: i32) -> (i32, i32) {
    %c0_i32 = arith.constant 0 : i32
    %c0_i32_0 = arith.constant 0 : i32
    return %arg0, %c0_i32 : i32, i32
  }
}

</mosaic_0001>

<bundles_post_ra>
// kernel: tpu_custom_call.1
= control target key start
LH: loop header
LB: loop body
LE: loop exit
PB: predicated region body
PF: predicated region fallthrough
CT: control target
= control target key end

     0   :  { %8 = vsyncpa [#allocation3], 0  ;;  %s849_s0 = inlined_call_operand.hbm [shape: f32[16,128], index: 0, kind: input, shape index: {}]   ;;  %s850_s1 = inlined_call_operand.hbm [shape: f32[128,128], index: 1, kind: input, shape index: {}]   ;;  %s851_s2 = inlined_call_operand.vmem [shape: f32[1,128], index: 2, kind: input, shape index: {}]   ;;  %s852_s3 = inlined_call_operand.hbm [shape: f32[16,128], index: 3, kind: output, shape index: {}]  }
   0x1   :  { %10 = vsyncpa [#allocation3 + $0x1], 0 }
   0x2   :  { %11 = vsyncpa [#allocation6], 0 }
   0x3   :  { %12 = vsyncpa [#allocation4], 0 }
   0x4   :  { %14 = vsyncpa [#allocation4 + $0x1], 0  ;;  %s679_s12 = smov 0   ;;  %s681_s13 = smov 0  }
   0x5   :  { %s683_s14 = smov 0   ;;  %s685_s15 = smov 0  }
   0x6 LB: > { %s700_s16 = sadd.s32 4294967295, %s650_s15   ;;  %s396_s17 = sadd.s32 4294967294, %s650_s15   ;;  %s650_s15 = sphi %s685_s15, %s874_s15   ;;  %s646_s14 = sphi %s683_s14, %s873_s14   ;;  %s642_s13 = sphi %s681_s13, %s872_s13   ;;  %s638_s12 = sphi %s679_s12, %s871_s12  }
   0x7   : > { %p40_p0 = scmp.ne.s32.totalorder %s642_s13, %s638_s12  ;;  %p853_p1 = scmp.eq.s32.totalorder %s700_s16, 0 }
   0x8   : > { %p112_p3 = scmp.eq.s32.totalorder %s396_s17, 1  ;;  %p397_p5 = scmp.ge.s32.totalorder %s650_s15, 1 }
   0x9   : > { %p709_p4 = por %p853_p1, %p40_p0  ;;  %p119_p7 = scmp.lt.s32.totalorder %s650_s15, 3 }
   0xa   : > { %p714_p6 = por %p112_p3, %p40_p0  ;;  %s652_s21 = smov [#allocation5]  }
   0xb   : > { %s857_s18 = scalar_select %p709_p4, 1, 0 }
   0xc   : > { %s858_s19 = scalar_select %p714_p6, 1, 0 }
   0xd   : > { %p719_p8 = pnand %p397_p5, %p119_p7  ;;  %s131_s22 = sshll.u32 %s652_s21, 4  ;;  %s132_s22 = int_to_ptr.vmem [resolvable:$true] %s131_s22 }
   0xe   : > { %s733_s24 = sadd.s32 1, %s650_s15   ;;  %s27_s25 = sadd.s32 1, %s646_s14 }
   0xf   : > { %s859_s20 = scalar_select %p719_p8, 1, 0 }
  0x10   : > { %p471_p9 = pneg %p719_p8  ;;  %s24_s26 = ssub.s32 %s650_s15, %s733_s24 }
  0x11   : > { %s539_s27 = scalar_lea.vmem %s132_s22, 2048  ;;  %p547_p5 = scmp.lt.s32.totalorder %s132_s22, %s132_s22 }
  0x12   : > { %p728_p11 = pnand %p471_p9, %p853_p1  ;;  %p540_p13 = scmp.ne.s32.totalorder %s132_s22, %s539_s27 }
  0x13   : > { %p548_p7 = scmp.lt.s32.totalorder %s539_s27, %s539_s27 }
  0x14   : > { %p530_p12 = pneg %p728_p11 }
  0x15   : > { %p549_p10 = por %p548_p7, %p547_p5 }
  0x16   : > { %p542_p0 = pnand %p540_p13, %p530_p12 }
  0x18   : > { %p543_p3 = pneg %p542_p0 }
  0x1a   : > { %p550_p2 = pnand %p549_p10, %p543_p3 }
  0x1c   : > { %553 = shalt.err (!%p550_p2)
}
  0x1d   : > { %s653_s28 = smov 128   ;;  %s654_s29 = smov 8  }
  0x1e   : > { %474 = dma.hbm_to_vmem [thread:$0]  (!%p728_p11), %s850_s1, 2048, %s132_s22, [#allocation6], %s653_s28, %s653_s28, %s654_s29  }
  0x1f   : > { %p25_p9 = scmp.eq.s32.totalorder %s24_s26, 0  ;;  %p34_p12 = scmp.ne.s32.totalorder %s646_s14, %s642_s13 }
  0x20   : > { %p35_p10 = scmp.eq.s32.totalorder %s650_s15, 0  ;;  %p484_p2 = scmp.lt.s32.totalorder %s650_s15, 2 }
  0x21   : > { %s750_s5 = scalar_select %p25_p9, %s646_s14, %s27_s25  }
  0x22   : > { %p36_p13 = por %p35_p10, %p34_p12  ;;  %p861_p0 = scmp.eq.s32.totalorder %s700_s16, 1 }
  0x23   : > { %s148_s7 = sand.u32 1, %s646_s14   ;;  %s401_s8 = sshll.u32 %s650_s15, 7 }
  0x24   : > { %p754_p3 = por %p861_p0, %p34_p12  ;;  %s400_s9 = sshll.u32 %s148_s7, 3 }
  0x25   : > { %s763_s17 = scalar_lea.hbm %s849_s0, %s401_s8  ;;  %s152_s21 = scalar_lea.vmem [#allocation2], %s400_s9 }
  0x26   : > { %s862_s6 = scalar_select %p754_p3, 1, 0 }
  0x27   : > { %s159_s22 = sshll.u32 %s152_s21, 4  ;;  %p765_p11 = pnand %p484_p2, %p36_p13  ;;  %s160_s22 = int_to_ptr.vmem [resolvable:$true] %s159_s22 }
  0x28   : > { %s149_s25 = scalar_lea.sflag [#allocation3], %s148_s7  ;;  %s554_s26 = scalar_lea.hbm %s763_s17, 128 }
  0x29   : > { %p555_p5 = scmp.ne.s32.totalorder %s763_s17, %s554_s26  ;;  %p556_p7 = pneg %p765_p11 }
  0x2a   : > { %s559_s29 = scalar_lea.hbm %s849_s0, 256  ;;  %p560_p10 = scmp.lt.s32.totalorder %s763_s17, %s849_s0 }
  0x2b   : > { %p557_p9 = pnand %p556_p7, %p555_p5  ;;  %p561_p2 = scmp.lt.s32.totalorder %s559_s29, %s554_s26 }
  0x2d   : > { %p558_p12 = pneg %p557_p9  ;;  %p562_p13 = por %p561_p2, %p560_p10 }
  0x2f   : > { %p563_p0 = pnand %p562_p13, %p558_p12 }
  0x31   : > { %566 = shalt.err (!%p563_p0)
}
  0x32   : > { %s567_s8 = scalar_lea.vmem %s160_s22, 128  ;;  %s655_s7 = smov [#allocation2]  }
  0x33   : > { %p568_p1 = scmp.ne.s32.totalorder %s160_s22, %s567_s8  ;;  %s572_s9 = sshll.u32 %s655_s7, 4  ;;  %s573_s9 = int_to_ptr.vmem [resolvable:$false] %s572_s9 }
  0x34   : > { %s574_s10 = scalar_lea.vmem %s573_s9, 256  ;;  %p575_p5 = scmp.lt.s32.totalorder %s160_s22, %s573_s9 }
  0x35   : > { %p570_p6 = pnand %p568_p1, %p556_p7  ;;  %p576_p9 = scmp.lt.s32.totalorder %s574_s10, %s567_s8 }
  0x37   : > { %p571_p3 = pneg %p570_p6  ;;  %p577_p4 = por %p576_p9, %p575_p5 }
  0x39   : > { %p578_p8 = pnand %p577_p4, %p571_p3 }
  0x3b   : > { %581 = shalt.err (!%p578_p8)
}
  0x3c   : > { %478 = dma.hbm_to_vmem [thread:$0]  (!%p765_p11), %s763_s17, 128, %s160_s22, %s149_s25  }
  0x3d   : > { %p864_p12 = scmp.ne.s32.totalorder %s859_s20, 0 }
  0x3e   : > { %s786_s11 = sand.u32 (!%p864_p12), 1, %s642_s13   ;;  %p865_p1 = scmp.ne.s32.totalorder (!%p864_p12), %s857_s18, 0 }
  0x3f   : > { %168 = sbr.rel (%p864_p12) target bundleno = 347 (0x15b), region = 32  ;;  %s403_s21 = sshll.u32 (!%p864_p12), %s786_s11, 3 }
  0x40   : > { %s171_s26 = scalar_lea.sflag (!%p864_p12), [#allocation3], %s786_s11  ;;  %s792_s27 = scalar_lea.vmem (!%p864_p12), [#allocation2], %s403_s21 }
  0x44   : > { %625 = dma.done.wait (%p865_p1), %s171_s26, 128  }
  0x45   : > { %627 = vsyncadd (%p865_p1), %s171_s26, 4294967168  ;;  %p866_p4 = scmp.eq.s32.totalorder %s700_s16, 0 }
  0x47   : > { %629 = dma.done.wait (%p866_p4), [#allocation6], 2048   ;;  %p867_p6 = pmov %p866_p4 }
  0x48   : > { %v656_v0 = vmov 0.0   ;;  %vm657_vm0 = vmmov 0   ;;  %v217_v1 = vld [vmem:[#allocation5 + $0x78] sm:$0xff]  ;;  %v216_v2 = vld [vmem:[#allocation5 + $0x70] sm:$0xff]  ;;  %v215_v3 = vld [vmem:[#allocation5 + $0x68] sm:$0xff]  ;;  %s408_s17 = sshll.u32 %s700_s16, 7 }
  0x49   : > { %631 = vsyncadd (%p867_p6), [#allocation6], 4294965248  ;;  %428 = vmatprep.subr.mxu0 %v656_v0  ;;  %460 = vmatprep.mubr.msk.f32.mxu0 %vm657_vm0, %v656_v0  ;;  %v214_v4 = vld [vmem:[#allocation5 + $0x60] sm:$0xff]  ;;  %v213_v5 = vld [vmem:[#allocation5 + $0x58] sm:$0xff]  ;;  %s200_s22 = scalar_lea.vmem [#allocation7], %s403_s21  ;;  %s812_s29 = scalar_lea.hbm %s852_s3, %s408_s17 }
  0x4a   : > { %429 = vmatpush3.msra.mxu0 %v217_v1  ;;  %v212_v6 = vld [vmem:[#allocation5 + $0x50] sm:$0xff]  ;;  %v211_v7 = vld [vmem:[#allocation5 + $0x48] sm:$0xff]  ;;  %v210_v8 = vld [vmem:[#allocation5 + $0x40] sm:$0xff]  ;;  %s316_s23 = sshll.u32 %s200_s22, 4  ;;  %s303_s30 = scalar_lea.sflag [#allocation4], %s786_s11  ;;  %s317_s23 = int_to_ptr.vmem [resolvable:$true] %s316_s23 }
  0x4b   : > { %430 = vmatprep.subr.mxu0 %v656_v0  ;;  %v209_v9 = vld [vmem:[#allocation5 + $0x38] sm:$0xff]  ;;  %v208_v10 = vld [vmem:[#allocation5 + $0x30] sm:$0xff]  ;;  %v207_v11 = vld [vmem:[#allocation5 + $0x28] sm:$0xff]  ;;  %s582_s4 = scalar_lea.vmem %s317_s23, 128  ;;  %p868_p3 = scmp.ne.s32.totalorder %s862_s6, 0 }
  0x4c   : > { %431 = vmatpush3.msra.mxu0 %v216_v2  ;;  %v206_v12 = vld [vmem:[#allocation5 + $0x20] sm:$0xff]  ;;  %v205_v13 = vld [vmem:[#allocation5 + $0x18] sm:$0xff]  ;;  %v204_v14 = vld [vmem:[#allocation5 + $0x10] sm:$0xff]  ;;  %p583_p8 = scmp.ne.s32.totalorder %s317_s23, %s582_s4  ;;  %s658_s8 = smov [#allocation7]  }
  0x4d   : > { %432 = vmatprep.subr.mxu0 %v656_v0  ;;  %v203_v15 = vld [vmem:[#allocation5 + $0x8] sm:$0xff]  ;;  %v202_v16 = vld [vmem:[#allocation5] sm:$0xff]  ;;  %v201_v17 = vld [vmem:[%s792_s27] sm:$0xff]  ;;  %s586_s7 = sshll.u32 %s658_s8, 4  ;;  %s587_s7 = int_to_ptr.vmem [resolvable:$false] %s586_s7 }
  0x4e   : > { %433 = vmatpush3.msra.mxu0 %v215_v3  ;;  %v406_v18 = vld [vmem:[%s851_s2] ss:$0 sm:$0xff]  ;;  %p584_p11 = pnand %p583_p8, %p868_p3  ;;  %s588_s16 = scalar_lea.vmem %s587_s7, 256 }
  0x4f   : > { %434 = vmatprep.subr.mxu0 %v656_v0  ;;  %p589_p10 = scmp.lt.s32.totalorder %s317_s23, %s587_s7  ;;  %p590_p2 = scmp.lt.s32.totalorder %s588_s16, %s582_s4 }
  0x50   : > { %435 = vmatpush3.msra.mxu0 %v214_v4  ;;  %p585_p7 = pneg %p584_p11 }
  0x51   : > { %436 = vmatprep.subr.mxu0 %v656_v0  ;;  %p591_p13 = por %p590_p2, %p589_p10 }
  0x52   : > { %437 = vmatpush3.msra.mxu0 %v213_v5 }
  0x53   : > { %438 = vmatprep.subr.mxu0 %v656_v0  ;;  %p592_p0 = pnand %p591_p13, %p585_p7 }
  0x54   : > { %439 = vmatpush3.msra.mxu0 %v212_v6 }
  0x55   : > { %440 = vmatprep.subr.mxu0 %v656_v0 }
  0x56   : > { %441 = vmatpush3.msra.mxu0 %v211_v7 }
  0x57   : > { %442 = vmatprep.subr.mxu0 %v656_v0 }
  0x58   : > { %443 = vmatpush3.msra.mxu0 %v210_v8 }
  0x59   : > { %444 = vmatprep.subr.mxu0 %v656_v0 }
  0x5a   : > { %445 = vmatpush3.msra.mxu0 %v209_v9 }
  0x5b   : > { %446 = vmatprep.subr.mxu0 %v656_v0 }
  0x5c   : > { %447 = vmatpush3.msra.mxu0 %v208_v10 }
  0x5d   : > { %448 = vmatprep.subr.mxu0 %v656_v0 }
  0x5e   : > { %449 = vmatpush3.msra.mxu0 %v207_v11 }
  0x5f   : > { %450 = vmatprep.subr.mxu0 %v656_v0 }
  0x60   : > { %451 = vmatpush3.msra.mxu0 %v206_v12 }
  0x61   : > { %452 = vmatprep.subr.mxu0 %v656_v0 }
  0x62   : > { %453 = vmatpush3.msra.mxu0 %v205_v13 }
  0x63   : > { %454 = vmatprep.subr.mxu0 %v656_v0 }
  0x64   : > { %455 = vmatpush3.msra.mxu0 %v204_v14 }
  0x65   : > { %456 = vmatprep.subr.mxu0 %v656_v0 }
  0x66   : > { %457 = vmatpush3.msra.mxu0 %v203_v15 }
  0x67   : > { %458 = vmatprep.subr.mxu0 %v656_v0 }
  0x68   : > { %459 = vmatpush3.msra.mxu0 %v202_v16 }
  0x69   : > { %461 = vmatmul.mubr.f32.vlgmr.msra.gmra.mxu0 %v201_v17 }
 0x129   : > { %v291_v19 = vpop.f32.mrf.mxu0 }
 0x12a   : > { %v292_v20 = vadd.f32 %v406_v18, %v291_v19 }
 0x12b   : > { %v462_v21 = vpop.f32.mrf.mxu0 }
 0x12c   : > { %v295_v22 = vsub.f32 0.0, %v292_v20 }
 0x12e   : > { %v296_v23 = vmul.f32 1.442695, %v295_v22 }
 0x130   : > { %524 = vpow2.f32 %v296_v23 }
 0x13d   : > { %v525_v24 = vpop.eup %524 }
 0x13e   : > { %v298_v25 = vadd.f32 1.0, %v525_v24 }
 0x140   : > { %526 = vrcp.f32 %v298_v25 }
 0x14d   : > { %v527_v26 = vpop.eup %526 }
 0x14e   : > { %301 = vst [vmem:[%s200_s22] sm:$0xff] %v527_v26 }
 0x14f   : > { %595 = shalt.err (!%p592_p0)
}
 0x150   : > { %s596_s9 = scalar_lea.hbm %s812_s29, 128  ;;  %s600_s21 = scalar_lea.hbm %s852_s3, 256 }
 0x151   : > { %p597_p5 = scmp.ne.s32.totalorder %s812_s29, %s596_s9  ;;  %p601_p1 = scmp.lt.s32.totalorder %s812_s29, %s852_s3 }
 0x152   : > { %p602_p4 = scmp.lt.s32.totalorder %s600_s21, %s596_s9 }
 0x153   : > { %p598_p9 = pnand %p597_p5, %p868_p3 }
 0x154   : > { %p603_p6 = por %p602_p4, %p601_p1 }
 0x155   : > { %p599_p12 = pneg %p598_p9 }
 0x157   : > { %p604_p8 = pnand %p603_p6, %p599_p12 }
 0x159   : > { %607 = shalt.err (!%p604_p8)
}
 0x15a   : > { %469 = dma.vmem_to_hbm [thread:$0]  (%p868_p3), %s317_s23, 128, %s812_s29, %s303_s30  }
 0x15b PF: > { %s328_s18 = sand.u32 1, %s638_s12   ;;  %p869_p11 = scmp.ne.s32.totalorder %s858_s19, 0 }
 0x15c   : > { %p870_p7 = scmp.ge.s32.totalorder %s650_s15, 2  ;;  %s329_s20 = scalar_lea.sflag [#allocation4], %s328_s18 }
 0x15e   : > { %p480_p10 = pnand %p870_p7, %p869_p11 }
 0x160   : > { %p481_p2 = pneg %p480_p10 }
 0x162   : > { %633 = dma.done.wait (%p481_p2), %s329_s20, 128  }
 0x163   : > { %635 = vsyncadd (%p481_p2), %s329_s20, 4294967168  ;;  %p17_p13 = scmp.ge.s32.totalorder %s733_s24, 4   ;;  %s871_s12 = smov %s642_s13 }
 0x164   : > { %s872_s13 = smov %s646_s14  ;;  %s873_s14 = smov %s750_s5 }
 0x165   : > { %s874_s15 = smov %s733_s24  ;;  %19 = sbr.rel (!%p17_p13) target bundleno = 6 (0x6), region = 81 }
 0x16a   :  { %334 = vsyncpa [#allocation3], 1 }
 0x16b   :  { %336 = vsyncpa [#allocation3 + $0x1], 1 }
 0x16c   :  { %337 = vsyncpa [#allocation6], 1 }
 0x16d   :  { %338 = vsyncpa [#allocation4], 1 }
 0x16e   :  { %340 = vsyncpa [#allocation4 + $0x1], 1 }

</bundles_post_ra>
